<compile_context>
chip_gen: v7x
topology: tpu7x:2x2x1
jax: 0.10.0
libtpu: 0.0.40
codegen_flags: <defaults>
</compile_context>

<pallas_src>
import functools
import math

import jax
import jax.numpy as jnp
import numpy as np
from jax.experimental import pallas as pl
from jax.experimental.pallas import tpu as pltpu


# Module-implied sizes: Linear(4600, 1) pins B * C_OUT * (L_IN - 2) == 4600.
C_IN, C_OUT, KSIZE = 24, 100, 3
FC_IN = 4600
BATCH = 1
L_OUT = FC_IN // (BATCH * C_OUT)          # 46
L_IN = L_OUT + KSIZE - 1                  # 48


def conv_baseline_kernel(x_ref, wck_ref, bconv_ref, wfc_ref, bfc_ref, o_ref,
                         *, ksize, l_out):
    # x_ref:     (C_IN, L_IN)          input sequence (batch squeezed)
    # wck_ref:   (KSIZE, C_OUT, C_IN)  conv weight, pre-transposed: wck_ref[k] is (C_OUT, C_IN)
    # bconv_ref: (C_OUT, 1)
    # wfc_ref:   (C_OUT, L_OUT)        fc weight reshaped in torch's view(-1) order
    # bfc_ref:   (1, 1)
    # o_ref:     (1, 1)

    # Conv1d as K shifted MXU matmuls: (C_OUT, C_IN) @ (C_IN, L_OUT).
    acc = jnp.zeros(wfc_ref.shape, dtype=jnp.float32)
    for k in range(ksize):                                   # static unroll (K=3)
        acc = acc + jnp.dot(wck_ref[k], x_ref[:, k:k + l_out],
                            preferred_element_type=jnp.float32)
    conv = acc + bconv_ref[...]                              # (C_OUT, L_OUT) + bias

    # Linear(4600, 1): torch's flatten order (c, l) matches wfc_ref layout, so the
    # matvec collapses to an elementwise multiply + full reduction (VPU + XLU).
    prod = conv * wfc_ref[...]
    fc = jnp.sum(jnp.sum(prod, axis=1, keepdims=True), axis=0, keepdims=True)
    fc = fc + bfc_ref[...]                                   # (1, 1)

    # TODO(synk): nn.MaxPool1d(2) applied to the (1, 1) post-FC tensor has a
    # zero-length output in PyTorch (invalid op); it is treated as identity here.
    y = jnp.maximum(fc, 0.0)                                 # ReLU
    o_ref[...] = (1.0 / (1.0 + jnp.exp(-y))).astype(o_ref.dtype)   # sigmoid


def conv_baseline_forward(pair, w_conv, b_conv, w_fc, b_fc):
    """pair: (1, C_IN, L_IN) f32 -> (1, 1) f32 = sigmoid(relu(fc(conv(pair))))."""
    b, c_in, l_in = pair.shape
    c_out, _, ksize = w_conv.shape
    l_out = l_in - ksize + 1
    assert b == 1 and c_in == C_IN
    assert b * c_out * l_out == w_fc.shape[1]

    # One-time parameter/layout glue (tiny, outside the hot path).
    x2d = pair[0]                                   # (C_IN, L_IN)
    wck = jnp.transpose(w_conv, (2, 0, 1))          # (KSIZE, C_OUT, C_IN)
    bconv2d = b_conv.reshape(c_out, 1)
    wfc2d = w_fc.reshape(c_out, l_out)              # row-major == torch view(-1) order
    bfc2d = b_fc.reshape(1, 1)

    kernel = functools.partial(conv_baseline_kernel, ksize=ksize, l_out=l_out)

    return pl.pallas_call(
        kernel,
        out_shape=jax.ShapeDtypeStruct((1, 1), jnp.float32),
        grid_spec=pltpu.PrefetchScalarGridSpec(
            num_scalar_prefetch=0,
            grid=(1,),
            in_specs=[
                pl.BlockSpec((c_in, l_in), lambda i: (0, 0)),
                pl.BlockSpec((ksize, c_out, c_in), lambda i: (0, 0, 0)),
                pl.BlockSpec((c_out, 1), lambda i: (0, 0)),
                pl.BlockSpec((c_out, l_out), lambda i: (0, 0)),
                pl.BlockSpec((1, 1), lambda i: (0, 0)),
            ],
            out_specs=pl.BlockSpec((1, 1), lambda i: (0, 0)),
        ),
        compiler_params=pltpu.CompilerParams(
            dimension_semantics=("arbitrary",),
        ),
    )(x2d, wck, bconv2d, wfc2d, bfc2d)


if __name__ == "__main__":
    key = jax.random.PRNGKey(0)
    k_x, k_wc, k_bc, k_wf, k_bf = jax.random.split(key, 5)

    # Deterministic input + parameters (PyTorch-default-style uniform init).
    pair = jax.random.normal(k_x, (BATCH, C_IN, L_IN), dtype=jnp.float32)
    kc = 1.0 / math.sqrt(C_IN * KSIZE)
    w_conv = jax.random.uniform(k_wc, (C_OUT, C_IN, KSIZE), jnp.float32, -kc, kc)
    b_conv = jax.random.uniform(k_bc, (C_OUT,), jnp.float32, -kc, kc)
    kf = 1.0 / math.sqrt(FC_IN)
    w_fc = jax.random.uniform(k_wf, (1, FC_IN), jnp.float32, -kf, kf)
    b_fc = jax.random.uniform(k_bf, (1,), jnp.float32, -kf, kf)

    out = conv_baseline_forward(pair, w_conv, b_conv, w_fc, b_fc)
    out = jax.block_until_ready(out)

    # Host-side float64 reference of the same forward pass.
    x_np = np.asarray(pair, dtype=np.float64)[0]
    wc_np = np.asarray(w_conv, dtype=np.float64)
    bc_np = np.asarray(b_conv, dtype=np.float64)
    wf_np = np.asarray(w_fc, dtype=np.float64)
    bf_np = np.asarray(b_fc, dtype=np.float64)

    conv_ref = np.zeros((C_OUT, L_OUT), dtype=np.float64)
    for k in range(KSIZE):
        conv_ref += wc_np[:, :, k] @ x_np[:, k:k + L_OUT]
    conv_ref += bc_np[:, None]
    fc_ref = conv_ref.reshape(-1) @ wf_np.reshape(-1) + bf_np[0]   # x.view(-1,1).T @ W.T + b
    y_ref = max(fc_ref, 0.0)                                       # maxpool(2)->identity, relu
    ref = 1.0 / (1.0 + np.exp(-y_ref))                             # sigmoid

    assert out.shape == (1, 1)
    np.testing.assert_allclose(np.asarray(out)[0, 0], ref, rtol=1e-4, atol=1e-4)

    print("KERNEL_OK")
</pallas_src>

<mosaic_0001>
module attributes {stable_mosaic.version = 11 : i64} {
  func.func @conv_baseline_kernel(%arg0: i32, %arg1: memref<24x48xf32, #tpu.memory_space<vmem>>, %arg2: memref<3x100x24xf32, #tpu.memory_space<vmem>>, %arg3: memref<100x1xf32, #tpu.memory_space<vmem>>, %arg4: memref<100x46xf32, #tpu.memory_space<vmem>>, %arg5: memref<1x1xf32, #tpu.memory_space<vmem>>, %arg6: memref<1x1xf32, #tpu.memory_space<vmem>>) attributes {dimension_semantics = [#tpu.dimension_semantics<arbitrary>], iteration_bounds = array<i64: 1>, scalar_prefetch = 0 : i64, scratch_operands = 0 : i64, tpu.core_type = #tpu.core_type<tc>, window_params = [{pipeline_mode = #tpu.pipeline_mode<synchronous>, transform_indices = @transform_0, window_bounds = array<i64: 24, 48>}, {pipeline_mode = #tpu.pipeline_mode<synchronous>, transform_indices = @transform_1, window_bounds = array<i64: 3, 100, 24>}, {pipeline_mode = #tpu.pipeline_mode<synchronous>, transform_indices = @transform_2, window_bounds = array<i64: 100, 1>}, {pipeline_mode = #tpu.pipeline_mode<synchronous>, transform_indices = @transform_3, window_bounds = array<i64: 100, 46>}, {pipeline_mode = #tpu.pipeline_mode<synchronous>, transform_indices = @transform_4, window_bounds = array<i64: 1, 1>}, {pipeline_mode = #tpu.pipeline_mode<synchronous>, transform_indices = @transform_5, window_bounds = array<i64: 1, 1>}]} {
    %cst = arith.constant 0.000000e+00 : f32
    %0 = vector.broadcast %cst : f32 to vector<100x46xf32>
    %c0 = arith.constant 0 : index
    %c0_0 = arith.constant 0 : index
    %c0_1 = arith.constant 0 : index
    %1 = vector.load %arg2[%c0, %c0_0, %c0_1] : memref<3x100x24xf32, #tpu.memory_space<vmem>>, vector<1x100x24xf32>
    %2 = vector.shape_cast %1 : vector<1x100x24xf32> to vector<100x24xf32>
    %c0_2 = arith.constant 0 : index
    %c0_3 = arith.constant 0 : index
    %3 = vector.load %arg1[%c0_2, %c0_3] : memref<24x48xf32, #tpu.memory_space<vmem>>, vector<24x46xf32>
    %cst_4 = arith.constant dense<0.000000e+00> : vector<100x46xf32>
    %4 = tpu.matmul %2, %3, %cst_4 {dimension_numbers = #tpu.dot_dimension_numbers<[1], [0], [0], [1], [0, 0, 1, 1], [], []>} : vector<100x24xf32>, vector<24x46xf32>, vector<100x46xf32> -> vector<100x46xf32>
    %5 = arith.addf %0, %4 : vector<100x46xf32>
    %c1 = arith.constant 1 : index
    %c0_5 = arith.constant 0 : index
    %c0_6 = arith.constant 0 : index
    %6 = vector.load %arg2[%c1, %c0_5, %c0_6] : memref<3x100x24xf32, #tpu.memory_space<vmem>>, vector<1x100x24xf32>
    %7 = vector.shape_cast %6 : vector<1x100x24xf32> to vector<100x24xf32>
    %c0_7 = arith.constant 0 : index
    %c1_8 = arith.constant 1 : index
    %8 = vector.load %arg1[%c0_7, %c1_8] : memref<24x48xf32, #tpu.memory_space<vmem>>, vector<24x46xf32>
    %cst_9 = arith.constant dense<0.000000e+00> : vector<100x46xf32>
    %9 = tpu.matmul %7, %8, %cst_9 {dimension_numbers = #tpu.dot_dimension_numbers<[1], [0], [0], [1], [0, 0, 1, 1], [], []>} : vector<100x24xf32>, vector<24x46xf32>, vector<100x46xf32> -> vector<100x46xf32>
    %10 = arith.addf %5, %9 : vector<100x46xf32>
    %c2 = arith.constant 2 : index
    %c0_10 = arith.constant 0 : index
    %c0_11 = arith.constant 0 : index
    %11 = vector.load %arg2[%c2, %c0_10, %c0_11] : memref<3x100x24xf32, #tpu.memory_space<vmem>>, vector<1x100x24xf32>
    %12 = vector.shape_cast %11 : vector<1x100x24xf32> to vector<100x24xf32>
    %c0_12 = arith.constant 0 : index
    %c2_13 = arith.constant 2 : index
    %13 = vector.load %arg1[%c0_12, %c2_13] : memref<24x48xf32, #tpu.memory_space<vmem>>, vector<24x46xf32>
    %cst_14 = arith.constant dense<0.000000e+00> : vector<100x46xf32>
    %14 = tpu.matmul %12, %13, %cst_14 {dimension_numbers = #tpu.dot_dimension_numbers<[1], [0], [0], [1], [0, 0, 1, 1], [], []>} : vector<100x24xf32>, vector<24x46xf32>, vector<100x46xf32> -> vector<100x46xf32>
    %15 = arith.addf %10, %14 : vector<100x46xf32>
    %c0_15 = arith.constant 0 : index
    %c0_16 = arith.constant 0 : index
    %16 = vector.load %arg3[%c0_15, %c0_16] : memref<100x1xf32, #tpu.memory_space<vmem>>, vector<100x1xf32>
    %17 = vector.broadcast %16 : vector<100x1xf32> to vector<100x46xf32>
    %18 = arith.addf %15, %17 : vector<100x46xf32>
    %c0_17 = arith.constant 0 : index
    %c0_18 = arith.constant 0 : index
    %19 = vector.load %arg4[%c0_17, %c0_18] : memref<100x46xf32, #tpu.memory_space<vmem>>, vector<100x46xf32>
    %20 = arith.mulf %18, %19 : vector<100x46xf32>
    %cst_19 = arith.constant dense<0.000000e+00> : vector<100xf32>
    %21 = vector.multi_reduction <add>, %20, %cst_19 [1] : vector<100x46xf32> to vector<100xf32>
    %22 = vector.shape_cast %21 : vector<100xf32> to vector<100x1xf32>
    %cst_20 = arith.constant dense<0.000000e+00> : vector<1xf32>
    %23 = vector.multi_reduction <add>, %22, %cst_20 [0] : vector<100x1xf32> to vector<1xf32>
    %24 = vector.shape_cast %23 : vector<1xf32> to vector<1x1xf32>
    %c0_21 = arith.constant 0 : index
    %c0_22 = arith.constant 0 : index
    %25 = vector.load %arg5[%c0_21, %c0_22] : memref<1x1xf32, #tpu.memory_space<vmem>>, vector<1x1xf32>
    %26 = arith.addf %24, %25 : vector<1x1xf32>
    %cst_23 = arith.constant 0.000000e+00 : f32
    %27 = vector.broadcast %cst_23 : f32 to vector<1x1xf32>
    %28 = arith.maximumf %26, %27 : vector<1x1xf32>
    %cst_24 = arith.constant 0.000000e+00 : f32
    %29 = vector.broadcast %cst_24 : f32 to vector<1x1xf32>
    %30 = arith.subf %29, %28 : vector<1x1xf32>
    %31 = math.exp %30 : vector<1x1xf32>
    %cst_25 = arith.constant 1.000000e+00 : f32
    %32 = vector.broadcast %cst_25 : f32 to vector<1x1xf32>
    %33 = arith.addf %32, %31 : vector<1x1xf32>
    %cst_26 = arith.constant 1.000000e+00 : f32
    %34 = vector.broadcast %cst_26 : f32 to vector<1x1xf32>
    %35 = arith.divf %34, %33 : vector<1x1xf32>
    %c0_27 = arith.constant 0 : index
    %c0_28 = arith.constant 0 : index
    %36 = vector.load %arg6[%c0_27, %c0_28] : memref<1x1xf32, #tpu.memory_space<vmem>>, vector<1x1xf32>
    tpu.vector_store %arg6[%c0_27, %c0_28], %35 {strides = array<i32>} : memref<1x1xf32, #tpu.memory_space<vmem>>, vector<1x1xf32>,
    return
  }
  func.func @transform_0(%arg0: i32) -> (i32, i32) {
    %c0_i32 = arith.constant 0 : i32
    %c0_i32_0 = arith.constant 0 : i32
    %c0_i32_1 = arith.constant 0 : i32
    return %c0_i32, %c0_i32_0 : i32, i32
  }
  func.func @transform_1(%arg0: i32) -> (i32, i32, i32) {
    %c0_i32 = arith.constant 0 : i32
    %c0_i32_0 = arith.constant 0 : i32
    %c0_i32_1 = arith.constant 0 : i32
    %c0_i32_2 = arith.constant 0 : i32
    return %c0_i32, %c0_i32_0, %c0_i32_1 : i32, i32, i32
  }
  func.func @transform_2(%arg0: i32) -> (i32, i32) {
    %c0_i32 = arith.constant 0 : i32
    %c0_i32_0 = arith.constant 0 : i32
    %c0_i32_1 = arith.constant 0 : i32
    return %c0_i32, %c0_i32_0 : i32, i32
  }
  func.func @transform_3(%arg0: i32) -> (i32, i32) {
    %c0_i32 = arith.constant 0 : i32
    %c0_i32_0 = arith.constant 0 : i32
    %c0_i32_1 = arith.constant 0 : i32
    return %c0_i32, %c0_i32_0 : i32, i32
  }
  func.func @transform_4(%arg0: i32) -> (i32, i32) {
    %c0_i32 = arith.constant 0 : i32
    %c0_i32_0 = arith.constant 0 : i32
    %c0_i32_1 = arith.constant 0 : i32
    return %c0_i32, %c0_i32_0 : i32, i32
  }
  func.func @transform_5(%arg0: i32) -> (i32, i32) {
    %c0_i32 = arith.constant 0 : i32
    %c0_i32_0 = arith.constant 0 : i32
    %c0_i32_1 = arith.constant 0 : i32
    return %c0_i32, %c0_i32_0 : i32, i32
  }
}

</mosaic_0001>

<bundles_post_ra>
// kernel: tpu_custom_call.1
= control target key start
LH: loop header
LB: loop body
LE: loop exit
PB: predicated region body
PF: predicated region fallthrough
CT: control target
= control target key end

     0   :  { %s1550_s0 = inlined_call_operand.vmem [shape: f32[24,48], index: 0, kind: input, shape index: {}]   ;;  %s1551_s1 = inlined_call_operand.vmem [shape: f32[3,100,24], index: 1, kind: input, shape index: {}]   ;;  %s1552_s2 = inlined_call_operand.vmem [shape: f32[100,1], index: 2, kind: input, shape index: {}]   ;;  %s1553_s3 = inlined_call_operand.vmem [shape: f32[100,46], index: 3, kind: input, shape index: {}]   ;;  %s1554_s4 = inlined_call_operand.<no memory space> [shape: f32[1,1], index: 4, kind: input, shape index: {}]   ;;  %s1555_s5 = inlined_call_operand.hbm [shape: f32[1,1], index: 5, kind: output, shape index: {}]  }
   0x1   :  { %v10_v0 = vstv %s1554_s4 }
   0x2   :  { %11 = vst [vmem:[#allocation2] sm:$0x1] %v10_v0 }
   0x3   :  { %v1163_v1 = vld [vmem:[%s1550_s0] sm:$0xff]  ;;  %v1168_v2 = vld [vmem:[%s1550_s0 + $0x8] sm:$0xff]  ;;  %v1120_v5 = vmov 0.0|0.0  }
   0x4   :  { %v1080_v3 = vpack.i.bf16 %v1168_v2, %v1163_v1  ;;  %v1064_v4 = vpack.c.bf16 %v1168_v2, %v1163_v1  ;;  %1060 = vmatprep.subr.bf16.mxu0 %v1120_v5  ;;  %1069 = vmatprep.subr.bf16.mxu1 %v1120_v5 }
   0x5   :  { %12 = vsyncpa [#allocation4], 0  ;;  %s1121_s4 = smov 127   ;;  %s1122_s24 = smov 126   ;;  %v1179_v6 = vld [vmem:[%s1550_s0 + $0x10] sm:$0xff]  ;;  %vm1123_vm0 = vmmov 0  }
   0x6   :  { %1081 = vrot.lane.b32.xlu0 %v1080_v3, %s1121_s4  ;;  %1086 = vrot.lane.b32.xlu1 %v1080_v3, %s1122_s24  ;;  %v1124_v7 = vmov 0.0   ;;  %v610_v8 = vld [vmem:[%s1552_s2 + $0x8] sm:$0xff]  ;;  %v609_v9 = vld [vmem:[%s1552_s2] sm:$0xff]  ;;  %v1125_v10 = vmov 0   ;;  %vm65_vm1 = vcmask 195584   ;;  %vm726_vm2 = vcmask 375808  }
   0x7   :  { %931 = vmatprep.mubr.msk.f32.mxu0 %vm1123_vm0, %v1124_v7  ;;  %952 = vmatprep.mubr.msk.f32.mxu1 %vm1123_vm0, %v1124_v7  ;;  %v611_v11 = vld [vmem:[%s1552_s2 + $0x10] sm:$0xff]  ;;  %v612_v12 = vld [vmem:[%s1552_s2 + $0x18] sm:$0xff]  ;;  %v613_v13 = vld [vmem:[%s1552_s2 + $0x20] sm:$0xff]  ;;  %vm763_vm3 = vcmask 371712   ;;  %vm778_vm4 = vcmask 1043456   ;;  %vm796_vm5 = vcmask 0  }
   0x8   :  { %1091 = vset.pattern.permute.xlu1 %v1125_v10  ;;  %1090 = vset.pattern.permute.xlu0 %v1125_v10  ;;  %v614_v14 = vld [vmem:[%s1552_s2 + $0x28] sm:$0xff]  ;;  %v615_v15 = vld [vmem:[%s1552_s2 + $0x30] sm:$0xff]  ;;  %v616_v16 = vld [vmem:[%s1552_s2 + $0x38] sm:$0xff] }
   0x9   :  { %v617_v17 = vld [vmem:[%s1552_s2 + $0x40] sm:$0xff]  ;;  %v618_v18 = vld [vmem:[%s1552_s2 + $0x48] sm:$0xff]  ;;  %v619_v19 = vld [vmem:[%s1552_s2 + $0x50] sm:$0xff] }
   0xa   :  { %60 = vrot.lane.b32.xlu0 %v1179_v6, %s1121_s4  ;;  %422 = vrot.lane.b32.xlu1 %v1179_v6, %s1122_s24  ;;  %v620_v20 = vld [vmem:[%s1552_s2 + $0x58] sm:$0xff]  ;;  %v621_v21 = vld [vmem:[%s1552_s2 + $0x60] sm:$0xf] }
   0xb   :  { %v812_v30 = vld [vmem:[%s1551_s1 + $0x68] sm:$0xff]  ;;  %v819_v31 = vld [vmem:[%s1551_s1 + $0xa0] sm:$0xff]  ;;  %v813_v33 = vld [vmem:[%s1551_s1 + $0x70] sm:$0xff] }
   0xc   :  { %v820_v34 = vld [vmem:[%s1551_s1 + $0xa8] sm:$0xff]  ;;  %v814_v36 = vld [vmem:[%s1551_s1 + $0x78] sm:$0xff]  ;;  %v821_v37 = vld [vmem:[%s1551_s1 + $0xb0] sm:$0xff] }
   0xd   :  { %v815_v38 = vld [vmem:[%s1551_s1 + $0x80] sm:$0xff]  ;;  %v822_v39 = vld [vmem:[%s1551_s1 + $0xb8] sm:$0xff]  ;;  %v816_v40 = vld [vmem:[%s1551_s1 + $0x88] sm:$0xff] }
   0xe   :  { %629 = vperm.xlu1 %1091, %v610_v8   ;;  %624 = vperm.xlu0 %1090, %v609_v9   ;;  %v823_v41 = vld [vmem:[%s1551_s1 + $0xc0] sm:$0xff]  ;;  %v817_v42 = vld [vmem:[%s1551_s1 + $0x90] sm:$0xff]  ;;  %v824_v43 = vld [vmem:[%s1551_s1 + $0xc8] sm:$0xf] }
   0xf   :  { %v818_v44 = vld [vmem:[%s1551_s1 + $0x98] sm:$0xff]  ;;  %v23_v45 = vld [vmem:[%s1551_s1] sm:$0xff]  ;;  %v24_v46 = vld [vmem:[%s1551_s1 + $0x8] sm:$0xff] }
  0x10   :  { %v851_v47 = vld [vmem:[%s1551_s1 + $0xd0] sm:$0xff]  ;;  %v852_v49 = vld [vmem:[%s1551_s1 + $0xd8] sm:$0xff]  ;;  %v853_v51 = vld [vmem:[%s1551_s1 + $0xe0] sm:$0xff] }
  0x11   :  { %v25_v48 = vld [vmem:[%s1551_s1 + $0x10] sm:$0xff]  ;;  %v26_v50 = vld [vmem:[%s1551_s1 + $0x18] sm:$0xff]  ;;  %v27_v52 = vld [vmem:[%s1551_s1 + $0x20] sm:$0xff] }
  0x12   :  { %634 = vperm.xlu1 %1091, %v611_v11   ;;  %639 = vperm.xlu0 %1090, %v612_v12   ;;  %v854_v53 = vld [vmem:[%s1551_s1 + $0xe8] sm:$0xff]  ;;  %v855_v55 = vld [vmem:[%s1551_s1 + $0xf0] sm:$0xff]  ;;  %v856_v57 = vld [vmem:[%s1551_s1 + $0xf8] sm:$0xff] }
  0x13   :  { %v28_v54 = vld [vmem:[%s1551_s1 + $0x28] sm:$0xff]  ;;  %v29_v56 = vld [vmem:[%s1551_s1 + $0x30] sm:$0xff]  ;;  %v30_v58 = vld [vmem:[%s1551_s1 + $0x38] sm:$0xff] }
  0x14   :  { %v857_v59 = vld [vmem:[%s1551_s1 + $0x100] sm:$0xff]  ;;  %v858_v61 = vld [vmem:[%s1551_s1 + $0x108] sm:$0xff]  ;;  %v859_v63 = vld [vmem:[%s1551_s1 + $0x110] sm:$0xff] }
  0x15   :  { %v31_v60 = vld [vmem:[%s1551_s1 + $0x40] sm:$0xff]  ;;  %v32_v62 = vld [vmem:[%s1551_s1 + $0x48] sm:$0xff]  ;;  %v33_v0 = vld [vmem:[%s1551_s1 + $0x50] sm:$0xff] }
  0x16   :  { %644 = vperm.xlu1 %1091, %v613_v13   ;;  %649 = vperm.xlu0 %1090, %v614_v14   ;;  %v860_v1 = vld [vmem:[%s1551_s1 + $0x118] sm:$0xff]  ;;  %v861_v3 = vld [vmem:[%s1551_s1 + $0x120] sm:$0xff] }
  0x17   :  { %v34_v2 = vld [vmem:[%s1551_s1 + $0x58] sm:$0xff] }
  0x1a   :  { %654 = vperm.xlu1 %1091, %v615_v15   ;;  %659 = vperm.xlu0 %1090, %v616_v16  }
  0x1e   :  { %664 = vperm.xlu1 %1091, %v617_v17   ;;  %669 = vperm.xlu0 %1090, %v618_v18  }
  0x22   :  { %674 = vperm.xlu1 %1091, %v619_v19   ;;  %679 = vperm.xlu0 %1090, %v620_v20  }
  0x26   :  { %684 = vperm.xlu1 %1091, %v621_v21  }
  0x78   :  { %v1082_v22 = vpop.permute.xlu0 %1081  ;;  %v1087_v25 = vpop.permute.xlu1 %1086 }
  0x79   :  { %v1084_v23 = vunpack.i.h.bf16 %v1082_v22  ;;  %v1083_v24 = vunpack.i.l.bf16 %v1082_v22  ;;  %v1089_v27 = vunpack.i.h.bf16 %v1087_v25  ;;  %v1088_v28 = vunpack.i.l.bf16 %v1087_v25 }
  0x7b   :  { %v1061_v26 = vpack.c.bf16 %v1084_v23, %v1083_v24  ;;  %v1067_v32 = vpack.c.bf16 %v1089_v27, %v1088_v28 }
  0x7c   :  { %v61_v29 = vpop.permute.xlu0 %60  ;;  %v423_v35 = vpop.permute.xlu1 %422 }
  0x7d   :  { %1062 = vmatpush3.bf16.msra.mxu0 %v1061_v26  ;;  %1071 = vmatpush3.bf16.msra.mxu1 %v1061_v26 }
  0x7e   :  { %929 = vmatprep.subr.mxu0 %v1124_v7  ;;  %1070 = vmatprep.subr.mxu1 %v1124_v7 }
  0x81   :  { %930 = vmatpush3.msra.mxu0 %v61_v29  ;;  %1072 = vmatpush3.msra.mxu1 %v61_v29 }
  0x82   :  { %932 = vmatmul.mubr.msk.f32.vlgmr.msra.gmra.mrb[0].mxu0 %vm65_vm1, %v812_v30  ;;  %953 = vmatmul.mubr.msk.f32.vlgmr.msra.gmra.mrb[0].mxu1 %vm65_vm1, %v819_v31 }
  0x83   :  { %1066 = vmatprep.subr.bf16.mxu0 %v1120_v5  ;;  %1063 = vmatprep.subr.bf16.mxu1 %v1120_v5  ;;  %v862_v5 = vld [vmem:[%s1551_s1 + $0x128] sm:$0xff] }
  0x84   :  { %1068 = vmatpush3.bf16.msra.mxu0 %v1067_v32  ;;  %934 = vmatprep.mubr.msk.f32.mxu0 %vm1123_vm0, %v1124_v7 }
  0x85   :  { %955 = vmatprep.mubr.msk.f32.mxu1 %vm1123_vm0, %v1124_v7  ;;  %1065 = vmatpush3.bf16.msra.mxu1 %v1064_v4  ;;  %v35_v4 = vld [vmem:[%s1551_s1 + $0x60] sm:$0xf] }
  0x86   :  { %935 = vmatmul.mubr.msk.f32.gmra.mrb[2].mxu0 %vm65_vm1, %v813_v33  ;;  %956 = vmatmul.mubr.msk.f32.gmra.mrb[2].mxu1 %vm65_vm1, %v820_v34 }
  0x87   :  { %937 = vmatprep.mubr.msk.f32.mxu0 %vm1123_vm0, %v1124_v7  ;;  %958 = vmatprep.mubr.msk.f32.mxu1 %vm1123_vm0, %v1124_v7 }
  0x88   :  { %974 = vmatprep.subr.mxu1 %v1124_v7  ;;  %1019 = vmatprep.subr.mxu0 %v1124_v7 }
  0x89   :  { %975 = vmatpush3.msra.mxu1 %v1179_v6  ;;  %1020 = vmatpush3.msra.mxu0 %v423_v35  ;;  %v863_v6 = vld [vmem:[%s1551_s1 + $0x130] sm:$0xf] }
  0x8a   :  { %938 = vmatmul.mubr.msk.f32.gmra.mrb[4].mxu0 %vm65_vm1, %v814_v36  ;;  %959 = vmatmul.mubr.msk.f32.gmra.mrb[4].mxu1 %vm65_vm1, %v821_v37 }
  0x8b   :  { %940 = vmatprep.mubr.msk.f32.mxu0 %vm1123_vm0, %v1124_v7  ;;  %961 = vmatprep.mubr.msk.f32.mxu1 %vm1123_vm0, %v1124_v7 }
  0x8d   :  { %v625_v36 = vpop.permute.xlu0 %624 }
  0x8e   :  { %941 = vmatmul.mubr.msk.f32.gmra.mrb[6].mxu0 %vm65_vm1, %v815_v38  ;;  %962 = vmatmul.mubr.msk.f32.gmra.mrb[6].mxu1 %vm65_vm1, %v822_v39 }
  0x8f   :  { %943 = vmatprep.mubr.msk.f32.mxu0 %vm1123_vm0, %v1124_v7  ;;  %964 = vmatprep.mubr.msk.f32.mxu1 %vm1123_vm0, %v1124_v7 }
  0x92   :  { %944 = vmatmul.mubr.msk.f32.gmra.mrb[8].mxu0 %vm65_vm1, %v816_v40  ;;  %965 = vmatmul.mubr.msk.f32.gmra.mrb[8].mxu1 %vm65_vm1, %v823_v41 }
  0x93   :  { %946 = vmatprep.mubr.msk.f32.mxu0 %vm1123_vm0, %v1124_v7  ;;  %967 = vmatprep.mubr.msk.f32.mxu1 %vm1123_vm0, %v1124_v7 }
  0x96   :  { %947 = vmatmul.mubr.msk.f32.gmra.mrb[10].mxu0 %vm65_vm1, %v817_v42  ;;  %968 = vmatmul.mubr.msk.f32.gmra.mrb[10].mxu1 %vm65_vm1, %v824_v43  ;;  %v700_v43 = vld [vmem:[%s1553_s3] sm:$0xff] }
  0x97   :  { %949 = vmatprep.mubr.msk.f32.mxu0 %vm1123_vm0, %v1124_v7  ;;  %976 = vmatprep.mubr.msk.f32.mxu1 %vm1123_vm0, %v1124_v7 }
  0x9a   :  { %950 = vmatmul.mubr.msk.f32.gmra.mrb[12].mxu0 %vm65_vm1, %v818_v44  ;;  %977 = vmatmul.mubr.msk.f32.vlgmr.msra.gmra.mrb[12].mxu1 %vm65_vm1, %v23_v45  ;;  %v630_v44 = vpop.permute.xlu1 %629 }
  0x9b   :  { %979 = vmatprep.mubr.msk.f32.mxu1 %vm1123_vm0, %v1124_v7  ;;  %1021 = vmatprep.mubr.msk.f32.mxu0 %vm1123_vm0, %v1124_v7 }
  0x9e   :  { %980 = vmatmul.mubr.msk.f32.gmra.mrb[14].mxu1 %vm65_vm1, %v24_v46  ;;  %1022 = vmatmul.mubr.msk.f32.vlgmr.msra.gmra.mrb[14].mxu0 %vm65_vm1, %v851_v47 }
  0x9f   :  { %982 = vmatprep.mubr.msk.f32.mxu1 %vm1123_vm0, %v1124_v7  ;;  %1024 = vmatprep.mubr.msk.f32.mxu0 %vm1123_vm0, %v1124_v7 }
  0xa2   :  { %983 = vmatmul.mubr.msk.f32.gmra.mrb[16].mxu1 %vm65_vm1, %v25_v48  ;;  %1025 = vmatmul.mubr.msk.f32.gmra.mrb[16].mxu0 %vm65_vm1, %v852_v49 }
  0xa3   :  { %985 = vmatprep.mubr.msk.f32.mxu1 %vm1123_vm0, %v1124_v7  ;;  %1027 = vmatprep.mubr.msk.f32.mxu0 %vm1123_vm0, %v1124_v7 }
  0xa6   :  { %986 = vmatmul.mubr.msk.f32.gmra.mrb[18].mxu1 %vm65_vm1, %v26_v50  ;;  %1028 = vmatmul.mubr.msk.f32.gmra.mrb[18].mxu0 %vm65_vm1, %v853_v51 }
  0xa7   :  { %988 = vmatprep.mubr.msk.f32.mxu1 %vm1123_vm0, %v1124_v7  ;;  %1030 = vmatprep.mubr.msk.f32.mxu0 %vm1123_vm0, %v1124_v7 }
  0xaa   :  { %989 = vmatmul.mubr.msk.f32.gmra.mrb[20].mxu1 %vm65_vm1, %v27_v52  ;;  %1031 = vmatmul.mubr.msk.f32.gmra.mrb[20].mxu0 %vm65_vm1, %v854_v53  ;;  %v701_v53 = vld [vmem:[%s1553_s3 + $0x8] sm:$0xff] }
  0xab   :  { %991 = vmatprep.mubr.msk.f32.mxu1 %vm1123_vm0, %v1124_v7  ;;  %1033 = vmatprep.mubr.msk.f32.mxu0 %vm1123_vm0, %v1124_v7 }
  0xae   :  { %992 = vmatmul.mubr.msk.f32.gmra.mrb[22].mxu1 %vm65_vm1, %v28_v54  ;;  %1034 = vmatmul.mubr.msk.f32.gmra.mrb[22].mxu0 %vm65_vm1, %v855_v55 }
  0xaf   :  { %994 = vmatprep.mubr.msk.f32.mxu1 %vm1123_vm0, %v1124_v7  ;;  %1036 = vmatprep.mubr.msk.f32.mxu0 %vm1123_vm0, %v1124_v7 }
  0xb2   :  { %995 = vmatmul.mubr.msk.f32.gmra.mrb[24].mxu1 %vm65_vm1, %v29_v56  ;;  %1037 = vmatmul.mubr.msk.f32.gmra.mrb[24].mxu0 %vm65_vm1, %v856_v57 }
  0xb3   :  { %997 = vmatprep.mubr.msk.f32.mxu1 %vm1123_vm0, %v1124_v7  ;;  %1039 = vmatprep.mubr.msk.f32.mxu0 %vm1123_vm0, %v1124_v7 }
  0xb6   :  { %998 = vmatmul.mubr.msk.f32.gmra.mrb[26].mxu1 %vm65_vm1, %v30_v58  ;;  %1040 = vmatmul.mubr.msk.f32.gmra.mrb[26].mxu0 %vm65_vm1, %v857_v59 }
  0xb7   :  { %1000 = vmatprep.mubr.msk.f32.mxu1 %vm1123_vm0, %v1124_v7  ;;  %1042 = vmatprep.mubr.msk.f32.mxu0 %vm1123_vm0, %v1124_v7 }
  0xba   :  { %1001 = vmatmul.mubr.msk.f32.gmra.mrb[28].mxu1 %vm65_vm1, %v31_v60  ;;  %1043 = vmatmul.mubr.msk.f32.gmra.mrb[28].mxu0 %vm65_vm1, %v858_v61 }
  0xbb   :  { %1003 = vmatprep.mubr.msk.f32.mxu1 %vm1123_vm0, %v1124_v7  ;;  %1045 = vmatprep.mubr.msk.f32.mxu0 %vm1123_vm0, %v1124_v7 }
  0xbe   :  { %1004 = vmatmul.mubr.msk.f32.gmra.mrb[30].mxu1 %vm65_vm1, %v32_v62  ;;  %1046 = vmatmul.mubr.msk.f32.gmra.mrb[30].mxu0 %vm65_vm1, %v859_v63  ;;  %v635_v63 = vpop.permute.xlu1 %634 }
  0xbf   :  { %1006 = vmatprep.mubr.msk.f32.mxu1 %vm1123_vm0, %v1124_v7  ;;  %1048 = vmatprep.mubr.msk.f32.mxu0 %vm1123_vm0, %v1124_v7 }
  0xc2   :  { %1007 = vmatmul.mubr.msk.f32.gmra.mrb[32].mxu1 %vm65_vm1, %v33_v0  ;;  %1049 = vmatmul.mubr.msk.f32.gmra.mrb[32].mxu0 %vm65_vm1, %v860_v1  ;;  %v702_v0 = vld [vmem:[%s1553_s3 + $0x10] sm:$0xff] }
  0xc3   :  { %1009 = vmatprep.mubr.msk.f32.mxu1 %vm1123_vm0, %v1124_v7  ;;  %1051 = vmatprep.mubr.msk.f32.mxu0 %vm1123_vm0, %v1124_v7 }
  0xc6   :  { %1010 = vmatmul.mubr.msk.f32.gmra.mrb[34].mxu1 %vm65_vm1, %v34_v2  ;;  %1052 = vmatmul.mubr.msk.f32.gmra.mrb[34].mxu0 %vm65_vm1, %v861_v3 }
  0xc7   :  { %1012 = vmatprep.mubr.msk.f32.mxu1 %vm1123_vm0, %v1124_v7  ;;  %1054 = vmatprep.mubr.msk.f32.mxu0 %vm1123_vm0, %v1124_v7 }
  0xca   :  { %1013 = vmatmul.mubr.msk.f32.gmra.mrb[36].mxu1 %vm65_vm1, %v35_v4  ;;  %1055 = vmatmul.mubr.msk.f32.gmra.mrb[36].mxu0 %vm65_vm1, %v862_v5 }
  0xcb   :  { %1057 = vmatprep.mubr.msk.f32.mxu0 %vm1123_vm0, %v1124_v7 }
  0xce   :  { %1058 = vmatmul.mubr.msk.f32.gmra.mrb[38].mxu0 %vm65_vm1, %v863_v6 }
 0x155   :  { %v171_v8 = vpop.f32.mrb[0].mxu0  ;;  %v1466_v9 = vpop.f32.mrb[0].mxu1 }
 0x156   :  { %v933_v10 = vpop.f32.mrb[1].mxu0  ;;  %v954_v11 = vpop.f32.mrb[1].mxu1 }
 0x159   :  { %v176_v12 = vpop.f32.mrb[2].mxu0  ;;  %v1468_v13 = vpop.f32.mrb[2].mxu1 }
 0x15a   :  { %v936_v14 = vpop.f32.mrb[3].mxu0  ;;  %v957_v15 = vpop.f32.mrb[3].mxu1 }
 0x15b   :  { %v703_v14 = vld [vmem:[%s1553_s3 + $0x18] sm:$0xff] }
 0x15d   :  { %v181_v16 = vpop.f32.mrb[4].mxu0  ;;  %v1470_v17 = vpop.f32.mrb[4].mxu1 }
 0x15e   :  { %v939_v7 = vpop.f32.mrb[5].mxu0  ;;  %v960_v18 = vpop.f32.mrb[5].mxu1 }
 0x161   :  { %v186_v19 = vpop.f32.mrb[6].mxu0  ;;  %v1472_v20 = vpop.f32.mrb[6].mxu1 }
 0x162   :  { %v942_v21 = vpop.f32.mrb[7].mxu0  ;;  %v963_v22 = vpop.f32.mrb[7].mxu1 }
 0x165   :  { %v191_v23 = vpop.f32.mrb[8].mxu0  ;;  %v1474_v24 = vpop.f32.mrb[8].mxu1 }
 0x166   :  { %v945_v25 = vpop.f32.mrb[9].mxu0  ;;  %v966_v26 = vpop.f32.mrb[9].mxu1 }
 0x169   :  { %v196_v27 = vpop.f32.mrb[10].mxu0  ;;  %v1476_v28 = vpop.f32.mrb[10].mxu1 }
 0x16a   :  { %v948_v29 = vpop.f32.mrb[11].mxu0  ;;  %v969_v30 = vpop.f32.mrb[11].mxu1 }
 0x16b   :  { %v704_v29 = vld [vmem:[%s1553_s3 + $0x20] sm:$0xff] }
 0x16d   :  { %v1478_v31 = vpop.f32.mrb[12].mxu0  ;;  %v340_v32 = vpop.f32.mrb[12].mxu1 }
 0x16e   :  { %v341_v33 = vadd.f32 %v340_v32, %v171_v8  ;;  %v951_v34 = vpop.f32.mrb[13].mxu0  ;;  %v978_v35 = vpop.f32.mrb[13].mxu1 }
 0x171   :  { %v345_v37 = vpop.f32.mrb[14].mxu1  ;;  %v532_v38 = vpop.f32.mrb[14].mxu0 }
 0x172   :  { %v346_v39 = vadd.f32 %v345_v37, %v176_v12  ;;  %v596_v40 = vadd.f32 %v532_v38, %v341_v33  ;;  %v1023_v41 = vpop.f32.mrb[15].mxu0  ;;  %v981_v42 = vpop.f32.mrb[15].mxu1 }
 0x173   :  { %v640_v12 = vpop.permute.xlu0 %639 }
 0x174   :  { %v687_v45 = vadd.f32 %v625_v36, %v596_v40  ;;  %v705_v40 = vld [vmem:[%s1553_s3 + $0x28] sm:$0xff] }
 0x175   :  { %v350_v46 = vpop.f32.mrb[16].mxu1  ;;  %v537_v47 = vpop.f32.mrb[16].mxu0 }
 0x176   :  { %v351_v48 = vadd.f32 %v350_v46, %v181_v16  ;;  %v597_v49 = vadd.f32 %v537_v47, %v346_v39  ;;  %v1026_v50 = vpop.f32.mrb[17].mxu0  ;;  %v984_v51 = vpop.f32.mrb[17].mxu1  ;;  %v713_v52 = vmul.f32 %v700_v43, %v687_v45 }
 0x177   :  { %v650_v39 = vpop.permute.xlu0 %649  ;;  %v706_v50 = vld [vmem:[%s1553_s3 + $0x30] sm:$0xff] }
 0x178   :  { %v688_v54 = vadd.f32 %v630_v44, %v597_v49  ;;  %v727_v55 = vsel %vm726_vm2, %v713_v52, 0.0 }
 0x179   :  { %v542_v56 = vpop.f32.mrb[18].mxu0  ;;  %728 = vadd.xlane.f32.xlu0 %v727_v55  ;;  %v355_v57 = vpop.f32.mrb[18].mxu1 }
 0x17a   :  { %v598_v58 = vadd.f32 %v542_v56, %v351_v48  ;;  %v356_v59 = vadd.f32 %v355_v57, %v186_v19  ;;  %v1029_v60 = vpop.f32.mrb[19].mxu0  ;;  %v987_v61 = vpop.f32.mrb[19].mxu1  ;;  %v714_v62 = vmul.f32 %v701_v53, %v688_v54 }
 0x17b   :  { %v707_v60 = vld [vmem:[%s1553_s3 + $0x38] sm:$0xff] }
 0x17c   :  { %v689_v1 = vadd.f32 %v635_v63, %v598_v58  ;;  %v730_v2 = vsel %vm726_vm2, %v714_v62, 0.0 }
 0x17d   :  { %v547_v3 = vpop.f32.mrb[20].mxu0  ;;  %731 = vadd.xlane.f32.xlu1 %v730_v2  ;;  %v360_v4 = vpop.f32.mrb[20].mxu1 }
 0x17e   :  { %v599_v5 = vadd.f32 %v547_v3, %v356_v59  ;;  %v361_v6 = vadd.f32 %v360_v4, %v191_v23  ;;  %v1032_v8 = vpop.f32.mrb[21].mxu0  ;;  %v990_v10 = vpop.f32.mrb[21].mxu1  ;;  %v715_v11 = vmul.f32 %v702_v0, %v689_v1 }
 0x17f   :  { %v645_v23 = vpop.permute.xlu1 %644  ;;  %v660_v59 = vpop.permute.xlu0 %659 }
 0x180   :  { %v690_v15 = vadd.f32 %v640_v12, %v599_v5  ;;  %v733_v16 = vsel %vm726_vm2, %v715_v11, 0.0 }
 0x181   :  { %v552_v7 = vpop.f32.mrb[22].mxu0  ;;  %734 = vadd.xlane.f32.xlu0 %v733_v16  ;;  %v365_v18 = vpop.f32.mrb[22].mxu1 }
 0x182   :  { %v600_v19 = vadd.f32 %v552_v7, %v361_v6  ;;  %v366_v21 = vadd.f32 %v365_v18, %v196_v27  ;;  %v1035_v22 = vpop.f32.mrb[23].mxu0  ;;  %v993_v25 = vpop.f32.mrb[23].mxu1  ;;  %v716_v26 = vmul.f32 %v703_v14, %v690_v15  ;;  %v708_v6 = vld [vmem:[%s1553_s3 + $0x40] sm:$0xff] }
 0x183   :  { %v655_v49 = vpop.permute.xlu1 %654  ;;  %v670_v18 = vpop.permute.xlu0 %669 }
 0x184   :  { %v691_v30 = vadd.f32 %v645_v23, %v600_v19  ;;  %v736_v32 = vsel %vm726_vm2, %v716_v26, 0.0  ;;  %v709_v19 = vld [vmem:[%s1553_s3 + $0x48] sm:$0xff] }
 0x185   :  { %v557_v33 = vpop.f32.mrb[24].mxu0  ;;  %737 = vadd.xlane.f32.xlu0 %v736_v32  ;;  %v370_v34 = vpop.f32.mrb[24].mxu1 }
 0x186   :  { %v601_v35 = vadd.f32 %v557_v33, %v366_v21  ;;  %v371_v36 = vadd.f32 %v370_v34, %v1478_v31  ;;  %v1038_v37 = vpop.f32.mrb[25].mxu0  ;;  %v996_v38 = vpop.f32.mrb[25].mxu1  ;;  %v717_v27 = vmul.f32 %v704_v29, %v691_v30  ;;  %v710_v34 = vld [vmem:[%s1553_s3 + $0x50] sm:$0xff] }
 0x187   :  { %v665_v5 = vpop.permute.xlu1 %664 }
 0x188   :  { %v692_v41 = vadd.f32 %v650_v39, %v601_v35  ;;  %v739_v42 = vsel %vm726_vm2, %v717_v27, 0.0 }
 0x189   :  { %v562_v43 = vpop.f32.mrb[26].mxu0  ;;  %740 = vadd.xlane.f32.xlu1 %v739_v42  ;;  %v375_v44 = vpop.f32.mrb[26].mxu1 }
 0x18a   :  { %v602_v45 = vadd.f32 %v562_v43, %v371_v36  ;;  %v376_v46 = vadd.f32 %v375_v44, %v1466_v9  ;;  %v1041_v47 = vpop.f32.mrb[27].mxu0  ;;  %v999_v48 = vpop.f32.mrb[27].mxu1  ;;  %v718_v31 = vmul.f32 %v705_v40, %v692_v41  ;;  %v711_v43 = vld [vmem:[%s1553_s3 + $0x58] sm:$0xff] }
 0x18b   :  { %v675_v33 = vpop.permute.xlu1 %674  ;;  %v680_v42 = vpop.permute.xlu0 %679 }
 0x18c   :  { %v693_v51 = vadd.f32 %v655_v49, %v602_v45  ;;  %v742_v52 = vsel %vm726_vm2, %v718_v31, 0.0 }
 0x18d   :  { %v567_v53 = vpop.f32.mrb[28].mxu0  ;;  %743 = vadd.xlane.f32.xlu0 %v742_v52  ;;  %v380_v54 = vpop.f32.mrb[28].mxu1 }
 0x18e   :  { %v603_v55 = vadd.f32 %v567_v53, %v376_v46  ;;  %v381_v56 = vadd.f32 %v380_v54, %v1468_v13  ;;  %v1044_v57 = vpop.f32.mrb[29].mxu0  ;;  %v1002_v58 = vpop.f32.mrb[29].mxu1  ;;  %v719_v9 = vmul.f32 %v706_v50, %v693_v51 }
 0x18f   :  { %v685_v49 = vpop.permute.xlu1 %684 }
 0x190   :  { %v694_v61 = vadd.f32 %v660_v59, %v603_v55  ;;  %v745_v62 = vsel %vm726_vm2, %v719_v9, 0.0 }
 0x191   :  { %v572_v63 = vpop.f32.mrb[30].mxu0  ;;  %746 = vadd.xlane.f32.xlu1 %v745_v62  ;;  %v385_v0 = vpop.f32.mrb[30].mxu1 }
 0x192   :  { %v604_v1 = vadd.f32 %v572_v63, %v381_v56  ;;  %v386_v2 = vadd.f32 %v385_v0, %v1470_v17  ;;  %v1047_v3 = vpop.f32.mrb[31].mxu0  ;;  %v1005_v4 = vpop.f32.mrb[31].mxu1  ;;  %v720_v13 = vmul.f32 %v707_v60, %v694_v61 }
 0x194   :  { %v695_v8 = vadd.f32 %v665_v5, %v604_v1  ;;  %v748_v10 = vsel %vm726_vm2, %v720_v13, 0.0 }
 0x195   :  { %v577_v11 = vpop.f32.mrb[32].mxu0  ;;  %749 = vadd.xlane.f32.xlu0 %v748_v10  ;;  %v390_v12 = vpop.f32.mrb[32].mxu1 }
 0x196   :  { %v605_v14 = vadd.f32 %v577_v11, %v386_v2  ;;  %v391_v15 = vadd.f32 %v390_v12, %v1472_v20  ;;  %v1050_v16 = vpop.f32.mrb[33].mxu0  ;;  %v1008_v7 = vpop.f32.mrb[33].mxu1  ;;  %v721_v17 = vmul.f32 %v708_v6, %v695_v8 }
 0x198   :  { %v696_v21 = vadd.f32 %v670_v18, %v605_v14  ;;  %v751_v22 = vsel %vm726_vm2, %v721_v17, 0.0 }
 0x199   :  { %v582_v25 = vpop.f32.mrb[34].mxu0  ;;  %752 = vadd.xlane.f32.xlu1 %v751_v22  ;;  %v395_v26 = vpop.f32.mrb[34].mxu1  ;;  %v787_v22 = vld [vmem:[#allocation2] sm:$0x1] }
 0x19a   :  { %v606_v23 = vadd.f32 %v582_v25, %v391_v15  ;;  %v396_v29 = vadd.f32 %v395_v26, %v1474_v24  ;;  %v1053_v30 = vpop.f32.mrb[35].mxu0  ;;  %v1011_v32 = vpop.f32.mrb[35].mxu1  ;;  %v722_v20 = vmul.f32 %v709_v19, %v696_v21 }
 0x19c   :  { %v697_v35 = vadd.f32 %v675_v33, %v606_v23  ;;  %v754_v36 = vsel %vm726_vm2, %v722_v20, 0.0 }
 0x19d   :  { %v587_v37 = vpop.f32.mrb[36].mxu0  ;;  %755 = vadd.xlane.f32.xlu0 %v754_v36  ;;  %v400_v38 = vpop.f32.mrb[36].mxu1 }
 0x19e   :  { %v607_v27 = vadd.f32 %v587_v37, %v396_v29  ;;  %v401_v39 = vadd.f32 %v400_v38, %v1476_v28  ;;  %v1056_v40 = vpop.f32.mrb[37].mxu0  ;;  %v1014_v41 = vpop.f32.mrb[37].mxu1  ;;  %v723_v24 = vmul.f32 %v710_v34, %v697_v35  ;;  %v712_v28 = vld [vmem:[%s1553_s3 + $0x60] sm:$0xf]  ;;  %s1126_s3 = smov [#allocation3]  }
 0x19f   :  { %s804_s18 = sshll.u32 %s1126_s3, 4  ;;  %s805_s18 = int_to_ptr.vmem [resolvable:$true] %s804_s18 }
 0x1a0   :  { %v698_v44 = vadd.f32 %v680_v42, %v607_v27  ;;  %v757_v45 = vsel %vm726_vm2, %v723_v24, 0.0  ;;  %s1096_s19 = scalar_lea.vmem %s805_s18, 16  ;;  %s1100_s20 = scalar_lea.vmem %s805_s18, 32 }
 0x1a1   :  { %v592_v46 = vpop.f32.mrb[38].mxu0  ;;  %758 = vadd.xlane.f32.xlu1 %v757_v45  ;;  %p1097_p0 = scmp.ne.s32.totalorder %s805_s18, %s1096_s19  ;;  %p1101_p1 = scmp.lt.s32.totalorder %s805_s18, %s805_s18 }
 0x1a2   :  { %v608_v47 = vadd.f32 %v592_v46, %v401_v39  ;;  %v1059_v48 = vpop.f32.mrb[39].mxu0  ;;  %v724_v31 = vmul.f32 %v711_v43, %v698_v44  ;;  %p1102_p2 = scmp.lt.s32.totalorder %s1100_s20, %s1096_s19 }
 0x1a4   :  { %v699_v50 = vadd.f32 %v685_v49, %v608_v47  ;;  %v760_v51 = vsel %vm726_vm2, %v724_v31, 0.0  ;;  %p1103_p3 = por %p1102_p2, %p1101_p1 }
 0x1a5   :  { %761 = vadd.xlane.f32.xlu0 %v760_v51 }
 0x1a6   :  { %v725_v52 = vmul.f32 %v712_v28, %v699_v50  ;;  %p1104_p4 = pnand %p1103_p3, %p1097_p0 }
 0x1a8   :  { %v764_v53 = vsel %vm763_vm3, %v725_v52, 0.0 }
 0x1a9   :  { %765 = vadd.xlane.f32.xlu1 %v764_v53 }
 0x206   :  { %v729_v54 = vpop.xlane.xlu0 %728 }
 0x20a   :  { %v732_v56 = vpop.xlane.xlu1 %731 }
 0x20b   :  { %v767_v57 = vadd.f32 %v732_v56, %v729_v54 }
 0x20e   :  { %v735_v55 = vpop.xlane.xlu0 %734 }
 0x20f   :  { %v768_v9 = vadd.f32 %v767_v57, %v735_v55 }
 0x212   :  { %v738_v58 = vpop.xlane.xlu0 %737 }
 0x213   :  { %v769_v60 = vadd.f32 %v768_v9, %v738_v58 }
 0x216   :  { %v741_v59 = vpop.xlane.xlu1 %740 }
 0x217   :  { %v770_v62 = vadd.f32 %v769_v60, %v741_v59 }
 0x21a   :  { %v744_v61 = vpop.xlane.xlu0 %743 }
 0x21b   :  { %v771_v0 = vadd.f32 %v770_v62, %v744_v61 }
 0x21e   :  { %v747_v63 = vpop.xlane.xlu1 %746 }
 0x21f   :  { %v772_v2 = vadd.f32 %v771_v0, %v747_v63 }
 0x222   :  { %v750_v1 = vpop.xlane.xlu0 %749 }
 0x223   :  { %v773_v4 = vadd.f32 %v772_v2, %v750_v1 }
 0x226   :  { %v753_v3 = vpop.xlane.xlu1 %752 }
 0x227   :  { %v774_v5 = vadd.f32 %v773_v4, %v753_v3 }
 0x22a   :  { %v756_v13 = vpop.xlane.xlu0 %755 }
 0x22b   :  { %v775_v8 = vadd.f32 %v774_v5, %v756_v13 }
 0x22e   :  { %v759_v6 = vpop.xlane.xlu1 %758 }
 0x22f   :  { %v776_v11 = vadd.f32 %v775_v8, %v759_v6 }
 0x232   :  { %v762_v10 = vpop.xlane.xlu0 %761 }
 0x233   :  { %v777_v12 = vadd.f32 %v776_v11, %v762_v10 }
 0x236   :  { %v766_v14 = vpop.xlane.xlu1 %765 }
 0x237   :  { %v779_v15 = vsel %vm778_vm4, %v766_v14, 0.0 }
 0x238   :  { %v780_v16 = vadd.f32 %v779_v15, %v777_v12 }
 0x23a   :  { %v781_v7 = vrot.slane %v780_v16, 4 }
 0x23c   :  { %v782_v17 = vadd.f32 %v781_v7, %v780_v16 }
 0x23e   :  { %v783_v18 = vrot.slane %v782_v17, 2 }
 0x240   :  { %v784_v19 = vadd.f32 %v783_v18, %v782_v17 }
 0x242   :  { %v785_v21 = vrot.slane %v784_v19, 1 }
 0x244   :  { %v786_v25 = vadd.f32 %v785_v21, %v784_v19 }
 0x246   :  { %v788_v26 = vadd.f32 %v787_v22, %v786_v25 }
 0x248   :  { %v789_v23 = vmax.f32 %v788_v26, 0.0 }
 0x24a   :  { %v790_v29 = vsub.f32 0.0, %v789_v23 }
 0x24c   :  { %v791_v30 = vmul.f32 1.442695, %v790_v29 }
 0x24e   :  { %1092 = vpow2.f32 %v791_v30 }
 0x258   :  { %v1093_v32 = vpop.eup %1092 }
 0x259   :  { %v793_v20 = vadd.f32 1.0, %v1093_v32 }
 0x25b   :  { %1094 = vrcp.f32 %v793_v20 }
 0x265   :  { %v1095_v33 = vpop.eup %1094 }
 0x266   :  { %797 = vst.msk [vmem:[#allocation3] sm:$0x1] %vm796_vm5, %v1095_v33 }
 0x267   :  { %1107 = shalt.err (!%p1104_p4)
}
 0x268   :  { %s1108_s22 = scalar_lea.hbm %s1555_s5, 16 }
 0x269   :  { %p1109_p5 = scmp.ne.s32.totalorder %s1555_s5, %s1108_s22  ;;  %p1112_p6 = scmp.lt.u32.totalorder %s1108_s22, %s1555_s5 }
 0x26b   :  { %p1114_p7 = pnand %p1112_p6, %p1109_p5 }
 0x26d   :  { %1117 = shalt.err (!%p1114_p7)
}
 0x26e   :  { %807 = dma.vmem_to_hbm [thread:$0]  %s805_s18, 16, %s1555_s5, [#allocation4]  }
 0x26f   :  { %1118 = dma.done.wait [#allocation4], 16  }
 0x270   :  { %1119 = vsyncadd [#allocation4], 4294967280 }
 0x271   :  { %811 = vsyncpa [#allocation4], 1 }

</bundles_post_ra>
